<compile_context>
chip_gen: v7x
topology: tpu7x:2x2x1
jax: 0.10.0
libtpu: 0.0.40
codegen_flags: <defaults>
</compile_context>

<pallas_src>
import numpy as np

import jax
import jax.numpy as jnp
from jax import lax
from jax.experimental import pallas as pl
from jax.experimental.pallas import tpu as pltpu


def _build_spatial_toeplitz(wsp, H, W):
    """Banded (2*HW, HW) matrix S such that, for pooled maps laid out as
    pooled_flat = [avg(HW) | max(HW)] along lanes,
        pooled_flat @ S == Conv2d(2, 1, k, padding=k//2)(pooled)   (no bias).
    Encodes both the x- and y-direction zero padding, so the in-kernel spatial
    conv is a single MXU matmul (no pad scratch, masks or shifted slices)."""
    k = int(wsp.shape[-1])
    r = k // 2
    HW = H * W
    py, px = np.meshgrid(np.arange(H), np.arange(W), indexing="ij")
    p = (py * W + px).reshape(-1)                       # output pixel index
    rows, cols, widx = [], [], []
    for c in range(2):
        for ky in range(k):
            for kx in range(k):
                qy = (py + ky - r).reshape(-1)
                qx = (px + kx - r).reshape(-1)
                valid = (qy >= 0) & (qy < H) & (qx >= 0) & (qx < W)
                rows.append(c * HW + qy[valid] * W + qx[valid])
                cols.append(p[valid])
                widx.append(np.full(int(valid.sum()), c * k * k + ky * k + kx))
    rows = np.concatenate(rows)
    cols = np.concatenate(cols)
    widx = np.concatenate(widx)
    wflat = jnp.asarray(wsp, jnp.float32).reshape(-1)
    return jnp.zeros((2 * HW, HW), jnp.float32).at[rows, cols].add(wflat[widx])


def _choose_batch_tile(n, per_sample_bytes, target_block_bytes=1 << 20):
    """Samples per grid step: ~1 MiB blocks (so the double-buffered in+out set
    is ~4 MiB), N % NB == 0 (no partial blocks), and grid length >= 2 (even
    when possible) so both v7x TensorCores get work and DMAs pipeline."""
    if n <= 1:
        return 1
    cap = max(1, min(n // 2, target_block_bytes // max(per_sample_bytes, 1)))
    divisors = [d for d in range(1, cap + 1) if n % d == 0]
    even_grid = [d for d in divisors if (n // d) % 2 == 0]
    return max(even_grid) if even_grid else max(divisors)


def _cbam_kernel(x_ref, w1t_ref, w2_ref, s_ref, b_ref, o_ref):
    nb = x_ref.shape[0]
    xf = x_ref[...].astype(jnp.float32)                        # (NB, C, HW)

    # ---- Channel attention: global avg/max pool -> shared MLP -> sigmoid ---
    avg_c = jnp.mean(xf, axis=2)                               # (NB, C)
    max_c = jnp.max(xf, axis=2)                                # (NB, C)
    w1t = w1t_ref[...]                                         # (C, Cmid) fc1.weight.T
    w2 = w2_ref[...]                                           # (C, Cmid) fc2.weight

    def mlp(p):                                                # (NB, C) -> (NB, C)
        h = jnp.sum(p[:, :, None] * w1t[None, :, :], axis=1)   # (NB, Cmid)
        h = jnp.maximum(h, 0.0)
        return jnp.sum(h[:, None, :] * w2[None, :, :], axis=2)  # (NB, C)

    ca = jax.nn.sigmoid(mlp(avg_c) + mlp(max_c))               # (NB, C)
    out1 = xf * ca[:, :, None]                                 # (NB, C, HW)

    # ---- Spatial attention: [avg|max] over C -> banded-Toeplitz MXU matmul -
    avg_s = jnp.mean(out1, axis=1)                             # (NB, HW)
    max_s = jnp.max(out1, axis=1)                              # (NB, HW)
    pooled = jnp.concatenate([avg_s, max_s], axis=1)           # (NB, 2*HW)
    m_pad = (-nb) % 8                                          # round M up to a sublane tile
    if m_pad:
        pooled = jnp.concatenate(
            [pooled, jnp.zeros((m_pad, pooled.shape[1]), jnp.float32)], axis=0)
    conv = jnp.dot(pooled, s_ref[...], preferred_element_type=jnp.float32)
    if m_pad:
        conv = conv[:nb]
    sa = jax.nn.sigmoid(conv + b_ref[0])                       # (NB, HW)

    # ---- Apply both attentions + residual; store in the input dtype --------
    o_ref[...] = (out1 * sa[:, None, :] + xf).astype(o_ref.dtype)


def cbam_block(x_nchw, params, *, sa_kernel=7):
    N, C, H, W = x_nchw.shape
    HW = H * W
    dtype = x_nchw.dtype
    assert params["sa_w"].shape[-1] == sa_kernel

    w1 = jnp.asarray(params["fc1_w"], jnp.float32)             # (Cmid, C)  fc1.weight
    w2 = jnp.asarray(params["fc2_w"], jnp.float32)             # (C, Cmid)  fc2.weight
    bsp = jnp.asarray(params["sa_b"], jnp.float32).reshape(1)
    Cmid = w1.shape[0]

    # Banded Toeplitz for the k x k "same" conv over both pooled channels.
    S = _build_spatial_toeplitz(params["sa_w"], H, W)          # (2*HW, HW) f32

    x_flat = x_nchw.reshape(N, C, HW)                          # free relabel, native dtype
    w1t = w1.T                                                 # (C, Cmid)

    NB = _choose_batch_tile(N, C * HW * dtype.itemsize)
    grid = (N // NB,)

    blk_bytes = NB * C * HW * dtype.itemsize
    vmem_est = (4 * blk_bytes                 # double-buffered in+out blocks
                + 2 * HW * HW * 4             # resident Toeplitz matrix
                + 6 * NB * C * HW * 4         # in-kernel f32 temporaries
                + (2 << 20))
    vmem_limit = int(min(32 << 20, max(16 << 20, vmem_est)))

    out_flat = pl.pallas_call(
        _cbam_kernel,
        out_shape=jax.ShapeDtypeStruct((N, C, HW), dtype),
        grid=grid,
        in_specs=[
            pl.BlockSpec((NB, C, HW), lambda n: (n, 0, 0)),     # activations
            pl.BlockSpec((C, Cmid), lambda n: (0, 0)),          # fc1.weight.T
            pl.BlockSpec((C, Cmid), lambda n: (0, 0)),          # fc2.weight
            pl.BlockSpec((2 * HW, HW), lambda n: (0, 0)),       # conv Toeplitz (resident)
            pl.BlockSpec(memory_space=pltpu.MemorySpace.SMEM),  # conv bias
        ],
        out_specs=pl.BlockSpec((NB, C, HW), lambda n: (n, 0, 0)),
        compiler_params=pltpu.CompilerParams(
            dimension_semantics=("parallel",),
            vmem_limit_bytes=vmem_limit),
    )(x_flat, w1t, w2, S, bsp)

    return out_flat.reshape(N, C, H, W)


def reference(x, params):
    """Pure-JAX reference of the PyTorch CBAMBlock forward (NCHW)."""
    with jax.default_matmul_precision("highest"):
        w1, w2 = params["fc1_w"], params["fc2_w"]
        wsp, bsp = params["sa_w"], params["sa_b"]
        avg = x.mean(axis=(2, 3))                              # (N, C)
        mx = x.max(axis=(2, 3))                                # (N, C)
        mlp = lambda v: jnp.maximum(v @ w1.T, 0.0) @ w2.T
        ca = jax.nn.sigmoid(mlp(avg) + mlp(mx))                # (N, C)
        out = x * ca[:, :, None, None]
        pooled = jnp.concatenate([out.mean(axis=1, keepdims=True),
                                  out.max(axis=1, keepdims=True)], axis=1)
        p = wsp.shape[-1] // 2
        sconv = lax.conv_general_dilated(
            pooled, wsp[None], (1, 1), [(p, p), (p, p)],
            dimension_numbers=("NCHW", "OIHW", "NCHW"))
        sa = jax.nn.sigmoid(sconv + bsp)
        return out * sa + x


if __name__ == "__main__":
    key = jax.random.PRNGKey(0)
    # reduction_ratio=16 requires in_channels >= 16; use 32 channels.
    N, C, H, W = 2, 32, 16, 16
    reduction, sk = 16, 7
    Cmid = C // reduction
    ks = jax.random.split(key, 5)
    params = {
        "fc1_w": jax.random.normal(ks[0], (Cmid, C), jnp.float32)
                 * jnp.sqrt(2.0 / C),
        "fc2_w": jax.random.normal(ks[1], (C, Cmid), jnp.float32)
                 * jnp.sqrt(2.0 / Cmid),
        "sa_w": jax.random.normal(ks[2], (2, sk, sk), jnp.float32)
                * jnp.sqrt(2.0 / (2 * sk * sk)),
        "sa_b": jax.random.normal(ks[3], (), jnp.float32) * 0.05,
    }
    x = jax.random.normal(ks[4], (N, C, H, W), jnp.float32)

    out = jax.block_until_ready(cbam_block(x, params, sa_kernel=sk))
    ref = jax.block_until_ready(reference(x, params))
    assert out.shape == (N, C, H, W), out.shape
    assert out.dtype == x.dtype, out.dtype
    assert bool(jnp.all(jnp.isfinite(out)))
    max_err = float(jnp.max(jnp.abs(out - ref)))
    # 5e-3 leaves headroom for MXU f32 rounding in the Toeplitz matmul.
    assert max_err < 5e-3, f"max abs error {max_err}"
    print("KERNEL_OK")
</pallas_src>

<mosaic_0001>
module attributes {stable_mosaic.version = 11 : i64} {
  func.func @_cbam_kernel(%arg0: i32, %arg1: memref<1x32x256xf32, #tpu.memory_space<vmem>>, %arg2: memref<32x2xf32, #tpu.memory_space<vmem>>, %arg3: memref<32x2xf32, #tpu.memory_space<vmem>>, %arg4: memref<512x256xf32, #tpu.memory_space<vmem>>, %arg5: memref<1xf32, #tpu.memory_space<smem>>, %arg6: memref<1x32x256xf32, #tpu.memory_space<vmem>>) attributes {dimension_semantics = [#tpu.dimension_semantics<parallel>], iteration_bounds = array<i64: 2>, scalar_prefetch = 0 : i64, scratch_operands = 0 : i64, tpu.core_type = #tpu.core_type<tc>, window_params = [{transform_indices = @transform_0, window_bounds = array<i64: 1, 32, 256>}, {pipeline_mode = #tpu.pipeline_mode<synchronous>, transform_indices = @transform_1, window_bounds = array<i64: 32, 2>}, {pipeline_mode = #tpu.pipeline_mode<synchronous>, transform_indices = @transform_2, window_bounds = array<i64: 32, 2>}, {pipeline_mode = #tpu.pipeline_mode<synchronous>, transform_indices = @transform_3, window_bounds = array<i64: 512, 256>}, {transform_indices = @transform_4, window_bounds = array<i64: 1>}, {transform_indices = @transform_5, window_bounds = array<i64: 1, 32, 256>}]} {
    %c0 = arith.constant 0 : index
    %c0_0 = arith.constant 0 : index
    %c0_1 = arith.constant 0 : index
    %0 = vector.load %arg1[%c0, %c0_0, %c0_1] : memref<1x32x256xf32, #tpu.memory_space<vmem>>, vector<1x32x256xf32>
    %cst = arith.constant dense<0.000000e+00> : vector<1x32xf32>
    %1 = vector.multi_reduction <add>, %0, %cst [2] : vector<1x32x256xf32> to vector<1x32xf32>
    %cst_2 = arith.constant 2.560000e+02 : f32
    %2 = vector.broadcast %cst_2 : f32 to vector<1x32xf32>
    %3 = arith.divf %1, %2 : vector<1x32xf32>
    %cst_3 = arith.constant dense<0xFF800000> : vector<1x32xf32>
    %4 = vector.multi_reduction <maximumf>, %0, %cst_3 [2] : vector<1x32x256xf32> to vector<1x32xf32>
    %c0_4 = arith.constant 0 : index
    %c0_5 = arith.constant 0 : index
    %5 = vector.load %arg2[%c0_4, %c0_5] : memref<32x2xf32, #tpu.memory_space<vmem>>, vector<32x2xf32>
    %c0_6 = arith.constant 0 : index
    %c0_7 = arith.constant 0 : index
    %6 = vector.load %arg3[%c0_6, %c0_7] : memref<32x2xf32, #tpu.memory_space<vmem>>, vector<32x2xf32>
    %7 = vector.shape_cast %3 : vector<1x32xf32> to vector<1x32x1xf32>
    %8 = vector.shape_cast %5 : vector<32x2xf32> to vector<1x32x2xf32>
    %9 = vector.broadcast %7 : vector<1x32x1xf32> to vector<1x32x2xf32>
    %10 = arith.mulf %9, %8 : vector<1x32x2xf32>
    %cst_8 = arith.constant dense<0.000000e+00> : vector<1x2xf32>
    %11 = vector.multi_reduction <add>, %10, %cst_8 [1] : vector<1x32x2xf32> to vector<1x2xf32>
    %cst_9 = arith.constant 0.000000e+00 : f32
    %12 = vector.broadcast %cst_9 : f32 to vector<1x2xf32>
    %13 = arith.maximumf %11, %12 : vector<1x2xf32>
    %14 = vector.shape_cast %13 : vector<1x2xf32> to vector<1x1x2xf32>
    %15 = vector.shape_cast %6 : vector<32x2xf32> to vector<1x32x2xf32>
    %16 = vector.broadcast %14 : vector<1x1x2xf32> to vector<1x32x2xf32>
    %17 = arith.mulf %16, %15 : vector<1x32x2xf32>
    %cst_10 = arith.constant dense<0.000000e+00> : vector<1x32xf32>
    %18 = vector.multi_reduction <add>, %17, %cst_10 [2] : vector<1x32x2xf32> to vector<1x32xf32>
    %19 = vector.shape_cast %4 : vector<1x32xf32> to vector<1x32x1xf32>
    %20 = vector.shape_cast %5 : vector<32x2xf32> to vector<1x32x2xf32>
    %21 = vector.broadcast %19 : vector<1x32x1xf32> to vector<1x32x2xf32>
    %22 = arith.mulf %21, %20 : vector<1x32x2xf32>
    %cst_11 = arith.constant dense<0.000000e+00> : vector<1x2xf32>
    %23 = vector.multi_reduction <add>, %22, %cst_11 [1] : vector<1x32x2xf32> to vector<1x2xf32>
    %cst_12 = arith.constant 0.000000e+00 : f32
    %24 = vector.broadcast %cst_12 : f32 to vector<1x2xf32>
    %25 = arith.maximumf %23, %24 : vector<1x2xf32>
    %26 = vector.shape_cast %25 : vector<1x2xf32> to vector<1x1x2xf32>
    %27 = vector.shape_cast %6 : vector<32x2xf32> to vector<1x32x2xf32>
    %28 = vector.broadcast %26 : vector<1x1x2xf32> to vector<1x32x2xf32>
    %29 = arith.mulf %28, %27 : vector<1x32x2xf32>
    %cst_13 = arith.constant dense<0.000000e+00> : vector<1x32xf32>
    %30 = vector.multi_reduction <add>, %29, %cst_13 [2] : vector<1x32x2xf32> to vector<1x32xf32>
    %31 = arith.addf %18, %30 : vector<1x32xf32>
    %32 = arith.negf %31 : vector<1x32xf32>
    %33 = math.exp %32 : vector<1x32xf32>
    %cst_14 = arith.constant 1.000000e+00 : f32
    %34 = vector.broadcast %cst_14 : f32 to vector<1x32xf32>
    %35 = arith.addf %34, %33 : vector<1x32xf32>
    %36 = arith.divf %34, %35 : vector<1x32xf32>
    %37 = vector.shape_cast %36 : vector<1x32xf32> to vector<1x32x1xf32>
    %38 = vector.broadcast %37 : vector<1x32x1xf32> to vector<1x32x256xf32>
    %39 = arith.mulf %0, %38 : vector<1x32x256xf32>
    %cst_15 = arith.constant dense<0.000000e+00> : vector<1x256xf32>
    %40 = vector.multi_reduction <add>, %39, %cst_15 [1] : vector<1x32x256xf32> to vector<1x256xf32>
    %cst_16 = arith.constant 3.200000e+01 : f32
    %41 = vector.broadcast %cst_16 : f32 to vector<1x256xf32>
    %42 = arith.divf %40, %41 : vector<1x256xf32>
    %cst_17 = arith.constant dense<0xFF800000> : vector<1x256xf32>
    %43 = vector.multi_reduction <maximumf>, %39, %cst_17 [1] : vector<1x32x256xf32> to vector<1x256xf32>
    %44 = tpu.concatenate %42, %43 in 1 : vector<1x256xf32>, vector<1x256xf32> -> vector<1x512xf32>
    %cst_18 = arith.constant 0.000000e+00 : f32
    %45 = vector.broadcast %cst_18 : f32 to vector<7x512xf32>
    %46 = tpu.concatenate %44, %45 in 0 : vector<1x512xf32>, vector<7x512xf32> -> vector<8x512xf32>
    %c0_19 = arith.constant 0 : index
    %c0_20 = arith.constant 0 : index
    %47 = vector.load %arg4[%c0_19, %c0_20] : memref<512x256xf32, #tpu.memory_space<vmem>>, vector<512x256xf32>
    %cst_21 = arith.constant dense<0.000000e+00> : vector<8x256xf32>
    %48 = tpu.matmul %46, %47, %cst_21 {dimension_numbers = #tpu.dot_dimension_numbers<[1], [0], [0], [1], [0, 0, 1, 1], [], []>} : vector<8x512xf32>, vector<512x256xf32>, vector<8x256xf32> -> vector<8x256xf32>
    %49 = vector.extract_strided_slice %48 {offsets = [0, 0], sizes = [1, 256], strides = [1, 1]} : vector<8x256xf32> to vector<1x256xf32>
    %c0_22 = arith.constant 0 : index
    %50 = memref.load %arg5[%c0_22] : memref<1xf32, #tpu.memory_space<smem>>
    %51 = vector.broadcast %50 : f32 to vector<1x256xf32>
    %52 = arith.addf %49, %51 : vector<1x256xf32>
    %53 = arith.negf %52 : vector<1x256xf32>
    %54 = math.exp %53 : vector<1x256xf32>
    %cst_23 = arith.constant 1.000000e+00 : f32
    %55 = vector.broadcast %cst_23 : f32 to vector<1x256xf32>
    %56 = arith.addf %55, %54 : vector<1x256xf32>
    %57 = arith.divf %55, %56 : vector<1x256xf32>
    %58 = vector.shape_cast %57 : vector<1x256xf32> to vector<1x1x256xf32>
    %59 = vector.broadcast %58 : vector<1x1x256xf32> to vector<1x32x256xf32>
    %60 = arith.mulf %39, %59 : vector<1x32x256xf32>
    %61 = arith.addf %60, %0 : vector<1x32x256xf32>
    %c0_24 = arith.constant 0 : index
    %c0_25 = arith.constant 0 : index
    %c0_26 = arith.constant 0 : index
    %62 = vector.load %arg6[%c0_24, %c0_25, %c0_26] : memref<1x32x256xf32, #tpu.memory_space<vmem>>, vector<1x32x256xf32>
    tpu.vector_store %arg6[%c0_24, %c0_25, %c0_26], %61 {strides = array<i32>} : memref<1x32x256xf32, #tpu.memory_space<vmem>>, vector<1x32x256xf32>,
    return
  }
  func.func @transform_0(%arg0: i32) -> (i32, i32, i32) {
    %c0_i32 = arith.constant 0 : i32
    %c0_i32_0 = arith.constant 0 : i32
    %c0_i32_1 = arith.constant 0 : i32
    return %arg0, %c0_i32, %c0_i32_0 : i32, i32, i32
  }
  func.func @transform_1(%arg0: i32) -> (i32, i32) {
    %c0_i32 = arith.constant 0 : i32
    %c0_i32_0 = arith.constant 0 : i32
    %c0_i32_1 = arith.constant 0 : i32
    return %c0_i32, %c0_i32_0 : i32, i32
  }
  func.func @transform_2(%arg0: i32) -> (i32, i32) {
    %c0_i32 = arith.constant 0 : i32
    %c0_i32_0 = arith.constant 0 : i32
    %c0_i32_1 = arith.constant 0 : i32
    return %c0_i32, %c0_i32_0 : i32, i32
  }
  func.func @transform_3(%arg0: i32) -> (i32, i32) {
    %c0_i32 = arith.constant 0 : i32
    %c0_i32_0 = arith.constant 0 : i32
    %c0_i32_1 = arith.constant 0 : i32
    return %c0_i32, %c0_i32_0 : i32, i32
  }
  func.func @transform_4(%arg0: i32) -> i32 {
    %c0_i32 = arith.constant 0 : i32
    %c0_i32_0 = arith.constant 0 : i32
    return %c0_i32 : i32
  }
  func.func @transform_5(%arg0: i32) -> (i32, i32, i32) {
    %c0_i32 = arith.constant 0 : i32
    %c0_i32_0 = arith.constant 0 : i32
    %c0_i32_1 = arith.constant 0 : i32
    return %arg0, %c0_i32, %c0_i32_0 : i32, i32, i32
  }
}

</mosaic_0001>

<bundles_post_ra>
// kernel: tpu_custom_call.1
= control target key start
LH: loop header
LB: loop body
LE: loop exit
PB: predicated region body
PF: predicated region fallthrough
CT: control target
= control target key end

     0   :  { %s1620_s0 = inlined_call_operand.hbm [shape: f32[2,32,256], index: 0, kind: input, shape index: {}]   ;;  %s1621_s1 = inlined_call_operand.vmem [shape: f32[32,2], index: 1, kind: input, shape index: {}]   ;;  %s1622_s2 = inlined_call_operand.vmem [shape: f32[32,2], index: 2, kind: input, shape index: {}]   ;;  %s1623_s3 = inlined_call_operand.hbm [shape: f32[512,256], index: 3, kind: input, shape index: {}]   ;;  %s1624_s4 = inlined_call_operand.<no memory space> [shape: f32[1], index: 4, kind: input, shape index: {}]   ;;  %s1625_s5 = inlined_call_operand.hbm [shape: f32[2,32,256], index: 5, kind: output, shape index: {}]  }
   0x1   :  { %10 = sst [smem:[#allocation2]] %s1624_s4 }
   0x2   :  { %11 = vsyncpa [#allocation4], 0 }
   0x3   :  { %13 = vsyncpa [#allocation4 + $0x1], 0 }
   0x4   :  { %14 = vsyncpa [#allocation7], 0 }
   0x5   :  { %15 = vsyncpa [#allocation5], 0 }
   0x6   :  { %17 = vsyncpa [#allocation5 + $0x1], 0  ;;  %s1281_s20 = smov 0   ;;  %s1283_s21 = smov 0  }
   0x7   :  { %s1285_s22 = smov 0   ;;  %s1287_s23 = smov 0  }
   0x8 LB: > { %s1302_s4 = sadd.s32 4294967295, %s1239_s23   ;;  %s868_s24 = sadd.s32 4294967294, %s1239_s23   ;;  %s1239_s23 = sphi %s1287_s23, %s1645_s23   ;;  %s1235_s22 = sphi %s1285_s22, %s1644_s22   ;;  %s1231_s21 = sphi %s1283_s21, %s1643_s21   ;;  %s1227_s20 = sphi %s1281_s20, %s1642_s20  }
   0x9   : > { %p43_p0 = scmp.ne.s32.totalorder %s1231_s21, %s1227_s20  ;;  %p1626_p1 = scmp.eq.s32.totalorder %s1302_s4, 0 }
   0xa   : > { %p157_p3 = scmp.eq.s32.totalorder %s868_s24, 1  ;;  %p869_p5 = scmp.ge.s32.totalorder %s1239_s23, 1 }
   0xb   : > { %p1311_p4 = por %p1626_p1, %p43_p0  ;;  %p164_p7 = scmp.lt.s32.totalorder %s1239_s23, 3 }
   0xc   : > { %p1316_p6 = por %p157_p3, %p43_p0  ;;  %s1241_s28 = smov [#allocation6]  }
   0xd   : > { %s1629_s25 = scalar_select %p1311_p4, 1, 0 }
   0xe   : > { %s1630_s26 = scalar_select %p1316_p6, 1, 0 }
   0xf   : > { %p1321_p8 = pnand %p869_p5, %p164_p7  ;;  %s182_s29 = sshll.u32 %s1241_s28, 4  ;;  %s1325_s29 = int_to_ptr.vmem [resolvable:$true] %s182_s29 }
  0x10   : > { %s1337_s6 = sadd.s32 1, %s1239_s23   ;;  %s30_s7 = sadd.s32 1, %s1235_s22 }
  0x11   : > { %s1631_s27 = scalar_select %p1321_p8, 1, 0 }
  0x12   : > { %p1034_p9 = pneg %p1321_p8  ;;  %s27_s8 = ssub.s32 %s1239_s23, %s1337_s6 }
  0x13   : > { %s1111_s11 = scalar_lea.hbm %s1623_s3, 16384 }
  0x14   : > { %p1332_p11 = pnand %p1034_p9, %p1626_p1  ;;  %p1112_p12 = scmp.ne.s32.totalorder %s1623_s3, %s1111_s11 }
  0x15   : > { %p1118_p5 = scmp.lt.u32.totalorder %s1111_s11, %s1623_s3 }
  0x16   : > { %p1113_p13 = pneg %p1332_p11 }
  0x18   : > { %p1114_p0 = pnand %p1113_p13, %p1112_p12 }
  0x1a   : > { %p1115_p3 = pneg %p1114_p0 }
  0x1c   : > { %p1120_p7 = pnand %p1118_p5, %p1115_p3 }
  0x1e   : > { %1123 = shalt.err (!%p1120_p7)
}
  0x1f   : > { %s1124_s16 = scalar_lea.vmem %s1325_s29, 16384  ;;  %p1132_p2 = scmp.lt.s32.totalorder %s1325_s29, %s1325_s29 }
  0x20   : > { %p1125_p9 = scmp.ne.s32.totalorder %s1325_s29, %s1124_s16  ;;  %p1133_p6 = scmp.lt.s32.totalorder %s1124_s16, %s1124_s16 }
  0x22   : > { %p1127_p10 = pnand %p1125_p9, %p1113_p13  ;;  %p1134_p4 = por %p1133_p6, %p1132_p2 }
  0x24   : > { %p1128_p1 = pneg %p1127_p10 }
  0x26   : > { %p1135_p8 = pnand %p1134_p4, %p1128_p1 }
  0x28   : > { %1138 = shalt.err (!%p1135_p8)
}
  0x29   : > { %s1242_s17 = smov 256   ;;  %s1243_s18 = smov 16  }
  0x2a   : > { %1037 = dma.hbm_to_vmem [thread:$0]  (!%p1332_p11), %s1623_s3, 16384, %s1325_s29, [#allocation7], %s1242_s17, %s1242_s17, %s1243_s18  }
  0x2b   : > { %p28_p1 = scmp.eq.s32.totalorder %s27_s8, 0  ;;  %p37_p2 = scmp.ne.s32.totalorder %s1235_s22, %s1231_s21 }
  0x2c   : > { %p38_p4 = scmp.eq.s32.totalorder %s1239_s23, 0  ;;  %p1047_p6 = scmp.lt.s32.totalorder %s1239_s23, 2 }
  0x2d   : > { %s1371_s28 = scalar_select %p28_p1, %s1235_s22, %s30_s7  }
  0x2e   : > { %p39_p8 = por %p38_p4, %p37_p2  ;;  %p1633_p10 = scmp.eq.s32.totalorder %s1302_s4, 1 }
  0x2f   : > { %s199_s30 = sand.u32 1, %s1235_s22   ;;  %s894_s10 = sshll.u32 %s1239_s23, 10 }
  0x30   : > { %p1375_p12 = por %p1633_p10, %p37_p2  ;;  %s872_s11 = sshll.u32 %s199_s30, 6 }
  0x31   : > { %s1384_s14 = scalar_lea.hbm %s1620_s0, %s894_s10  ;;  %s203_s29 = scalar_lea.vmem [#allocation3], %s872_s11 }
  0x32   : > { %s210_s7 = sshll.u32 %s203_s29, 4  ;;  %p1386_p11 = pnand %p1047_p6, %p39_p8  ;;  %s1390_s7 = int_to_ptr.vmem [resolvable:$true] %s210_s7 }
  0x33   : > { %s1392_s15 = scalar_lea.sflag [#allocation4], %s199_s30  ;;  %s1139_s16 = scalar_lea.hbm %s1384_s14, 1024 }
  0x34   : > { %p1140_p13 = scmp.ne.s32.totalorder %s1384_s14, %s1139_s16  ;;  %p1141_p0 = pneg %p1386_p11 }
  0x35   : > { %s1144_s10 = scalar_lea.hbm %s1620_s0, 2048  ;;  %p1145_p7 = scmp.lt.u32.totalorder %s1384_s14, %s1620_s0 }
  0x36   : > { %p1142_p3 = pnand %p1141_p0, %p1140_p13  ;;  %p1146_p9 = scmp.lt.u32.totalorder %s1144_s10, %s1139_s16 }
  0x37   : > { %p1148_p2 = scmp.lt.u32.totalorder %s1139_s16, %s1384_s14 }
  0x38   : > { %p1143_p5 = pneg %p1142_p3  ;;  %p1147_p1 = por %p1146_p9, %p1145_p7 }
  0x3a   : > { %p1149_p4 = por %p1148_p2, %p1147_p1 }
  0x3c   : > { %p1150_p6 = pnand %p1149_p4, %p1143_p5 }
  0x3e   : > { %1153 = shalt.err (!%p1150_p6)
}
  0x3f   : > { %s1154_s30 = scalar_lea.vmem %s1390_s7, 1024  ;;  %s1244_s13 = smov [#allocation3]  }
  0x40   : > { %p1155_p8 = scmp.ne.s32.totalorder %s1390_s7, %s1154_s30  ;;  %s1159_s29 = sshll.u32 %s1244_s13, 4  ;;  %s1160_s29 = int_to_ptr.vmem [resolvable:$false] %s1159_s29 }
  0x41   : > { %s1161_s19 = scalar_lea.vmem %s1160_s29, 2048  ;;  %p1162_p3 = scmp.lt.s32.totalorder %s1390_s7, %s1160_s29 }
  0x42   : > { %p1157_p10 = pnand %p1155_p8, %p1141_p0  ;;  %p1163_p7 = scmp.lt.s32.totalorder %s1161_s19, %s1154_s30 }
  0x44   : > { %p1158_p13 = pneg %p1157_p10  ;;  %p1164_p9 = por %p1163_p7, %p1162_p3 }
  0x46   : > { %p1165_p1 = pnand %p1164_p9, %p1158_p13 }
  0x48   : > { %1168 = shalt.err (!%p1165_p1)
}
  0x49   : > { %1041 = dma.hbm_to_vmem [thread:$0]  (!%p1386_p11), %s1384_s14, 1024, %s1390_s7, %s1392_s15, %s1242_s17, %s1242_s17, %s1243_s18  }
  0x4a   : > { %p1636_p0 = scmp.ne.s32.totalorder %s1631_s27, 0 }
  0x4b   : > { %s1426_s16 = sand.u32 (!%p1636_p0), 1, %s1231_s21   ;;  %p1637_p5 = scmp.ne.s32.totalorder (!%p1636_p0), %s1629_s25, 0 }
  0x4c   : > { %222 = sbr.rel (%p1636_p0) target bundleno = 736 (0x2e0), region = 40  ;;  %s876_s24 = sshll.u32 (!%p1636_p0), %s1426_s16, 6 }
  0x4d   : > { %s225_s10 = scalar_lea.sflag (!%p1636_p0), [#allocation4], %s1426_s16  ;;  %s228_s8 = scalar_lea.vmem (!%p1636_p0), [#allocation3], %s876_s24 }
  0x53   : > { %1214 = dma.done.wait (%p1637_p5), %s225_s10, 1024  }
  0x54   : > { %1216 = vsyncadd (%p1637_p5), %s225_s10, 4294966272  ;;  %p1638_p11 = scmp.eq.s32.totalorder %s1302_s4, 0 }
  0x56   : > { %1218 = dma.done.wait (%p1638_p11), [#allocation7], 16384   ;;  %p1639_p2 = pmov %p1638_p11 }
  0x57   : > { %v1440_v0 = vld [vmem:[%s228_s8 + $0x20] sm:$0xff]  ;;  %v1442_v1 = vld [vmem:[%s228_s8 + $0x28] sm:$0xff]  ;;  %v1450_v5 = vld [vmem:[%s228_s8 + $0x10] sm:$0xff]  ;;  %vm308_vm0 = vcmask 15360   ;;  %vm448_vm1 = vcmask 1040384   ;;  %s723_s27 = sld [smem:[#allocation2]] }
  0x58   : > { %1220 = vsyncadd (%p1639_p2), [#allocation7], 4294950912  ;;  %v1444_v2 = vld [vmem:[%s228_s8] sm:$0xff]  ;;  %v273_v3 = vadd.f32 %v1442_v1, %v1440_v0  ;;  %v1448_v4 = vld [vmem:[%s228_s8 + $0x8] sm:$0xff]  ;;  %v290_v15 = vmax.f32 %v1440_v0, %v1442_v1  ;;  %s895_s17 = sshll.u32 %s1302_s4, 10  ;;  %s258_s18 = scalar_lea.vmem [#allocation8], %s876_s24 }
  0x59   : > { %v1452_v6 = vld [vmem:[%s228_s8 + $0x18] sm:$0xff]  ;;  %v267_v7 = vadd.f32 %v1448_v4, %v1444_v2  ;;  %v284_v8 = vmax.f32 %v1444_v2, %v1448_v4  ;;  %v1460_v10 = vld [vmem:[%s228_s8 + $0x30] sm:$0xff]  ;;  %v454_v16 = vld [vmem:[#allocation6 + $0x8] sm:$0xff]  ;;  %s785_s14 = sshll.u32 %s258_s18, 4  ;;  %s1570_s7 = scalar_lea.hbm %s1625_s5, %s895_s17  ;;  %s1572_s14 = int_to_ptr.vmem [resolvable:$true] %s785_s14 }
  0x5a   : > { %274 = vadd.xlane.f32.xlu1 %v273_v3  ;;  %v270_v9 = vadd.f32 %v1452_v6, %v1450_v5  ;;  %v1462_v11 = vld [vmem:[%s228_s8 + $0x38] sm:$0xff]  ;;  %v287_v13 = vmax.f32 %v1450_v5, %v1452_v6  ;;  %v518_v18 = vld [vmem:[#allocation6 + $0x208] sm:$0xff]  ;;  %v453_v21 = vld [vmem:[#allocation6] sm:$0xff]  ;;  %s772_s15 = scalar_lea.sflag [#allocation5], %s1426_s16  ;;  %s1169_s11 = scalar_lea.vmem %s1572_s14, 1024 }
  0x5b   : > { %268 = vadd.xlane.f32.xlu0 %v267_v7  ;;  %v276_v12 = vadd.f32 %v1462_v11, %v1460_v10  ;;  %v293_v14 = vmax.f32 %v1460_v10, %v1462_v11  ;;  %v456_v17 = vld [vmem:[#allocation6 + $0x18] sm:$0xff]  ;;  %v455_v22 = vld [vmem:[#allocation6 + $0x10] sm:$0xff]  ;;  %v517_v25 = vld [vmem:[#allocation6 + $0x200] sm:$0xff]  ;;  %p1170_p4 = scmp.ne.s32.totalorder %s1572_s14, %s1169_s11  ;;  %s1245_s12 = smov [#allocation8]  }
  0x5c   : > { %v896_v19 = vpack.c.bf16 %v456_v17, %v454_v16  ;;  %v520_v20 = vld [vmem:[#allocation6 + $0x218] sm:$0xff]  ;;  %v898_v24 = vpack.c.bf16 %v455_v22, %v453_v21  ;;  %v519_v26 = vld [vmem:[#allocation6 + $0x210] sm:$0xff]  ;;  %v458_v27 = vld [vmem:[#allocation6 + $0x28] sm:$0xff]  ;;  %s1173_s30 = sshll.u32 %s1245_s12, 4  ;;  %s1174_s30 = int_to_ptr.vmem [resolvable:$false] %s1173_s30 }
  0x5d   : > { %v960_v23 = vpack.c.bf16 %v520_v20, %v518_v18  ;;  %v962_v28 = vpack.c.bf16 %v519_v26, %v517_v25  ;;  %v460_v29 = vld [vmem:[#allocation6 + $0x38] sm:$0xff]  ;;  %v522_v30 = vld [vmem:[#allocation6 + $0x228] sm:$0xff]  ;;  %v296_v37 = vld [vmem:[%s1621_s1] sm:$0xff]  ;;  %p1171_p6 = pnand %p1170_p4, %p1375_p12  ;;  %s1175_s13 = scalar_lea.vmem %s1174_s30, 2048 }
  0x5e   : > { %285 = vmax.xlane.f32.xlu1 %v284_v8  ;;  %897 = vmatprep.subr.bf16.mxu1 %v896_v19  ;;  %v524_v31 = vld [vmem:[#allocation6 + $0x238] sm:$0xff]  ;;  %v900_v32 = vpack.c.bf16 %v460_v29, %v458_v27  ;;  %v297_v41 = vld [vmem:[%s1621_s1 + $0x8] sm:$0xff]  ;;  %v298_v42 = vld [vmem:[%s1621_s1 + $0x10] sm:$0xff]  ;;  %p1176_p10 = scmp.lt.s32.totalorder %s1572_s14, %s1174_s30  ;;  %p1177_p13 = scmp.lt.s32.totalorder %s1175_s13, %s1169_s11 }
  0x5f   : > { %271 = vadd.xlane.f32.xlu0 %v270_v9  ;;  %961 = vmatprep.subr.bf16.mxu0 %v960_v23  ;;  %v964_v33 = vpack.c.bf16 %v524_v31, %v522_v30  ;;  %v299_v48 = vld [vmem:[%s1621_s1 + $0x18] sm:$0xff]  ;;  %v301_v30 = vld [vmem:[%s1622_s2 + $0x8] sm:$0xff]  ;;  %v300_v31 = vld [vmem:[%s1622_s2] sm:$0xff]  ;;  %p1172_p8 = pneg %p1171_p6 }
  0x60   : > { %899 = vmatpush1.bf16.msra.mxu1 %v898_v24  ;;  %963 = vmatpush1.bf16.msra.mxu0 %v962_v28  ;;  %p1178_p3 = por %p1177_p13, %p1176_p10 }
  0x61   : > { %901 = vmatprep.subr.bf16.mxu1 %v900_v32  ;;  %965 = vmatprep.subr.bf16.mxu0 %v964_v33 }
  0x62   : > { %277 = vadd.xlane.f32.xlu1 %v276_v12  ;;  %p1179_p7 = pnand %p1178_p3, %p1172_p8 }
  0x63   : > { %288 = vmax.xlane.f32.xlu0 %v287_v13 }
  0x66   : > { %294 = vmax.xlane.f32.xlu1 %v293_v14 }
  0x67   : > { %291 = vmax.xlane.f32.xlu0 %v290_v15 }
  0xe7   : > { %v275_v34 = vpop.xlane.xlu1 %274 }
  0xe8   : > { %v269_v35 = vpop.xlane.xlu0 %268  ;;  %v282_v38 = vmul.f32 0.00390625, %v275_v34  ;;  %v302_v34 = vld [vmem:[%s1622_s2 + $0x10] sm:$0xff] }
  0xe9   : > { %v280_v36 = vmul.f32 0.00390625, %v269_v35 }
  0xea   : > { %v306_v47 = vmul.f32 %v298_v42, %v282_v38 }
  0xeb   : > { %v286_v39 = vpop.xlane.xlu1 %285  ;;  %v304_v43 = vmul.f32 %v296_v37, %v280_v36 }
  0xec   : > { %v272_v40 = vpop.xlane.xlu0 %271  ;;  %v339_v52 = vmul.f32 %v296_v37, %v286_v39  ;;  %v312_v58 = vsel %vm308_vm0, %v306_v47, 0.0 }
  0xed   : > { %v281_v44 = vmul.f32 0.00390625, %v272_v40  ;;  %v309_v51 = vsel %vm308_vm0, %v304_v43, 0.0  ;;  %v303_v43 = vld [vmem:[%s1622_s2 + $0x18] sm:$0xff] }
  0xee   : > { %v343_v3 = vsel %vm308_vm0, %v339_v52, 0.0  ;;  %v521_v52 = vld [vmem:[#allocation6 + $0x220] sm:$0xff] }
  0xef   : > { %v278_v45 = vpop.xlane.xlu1 %277  ;;  %v305_v46 = vmul.f32 %v297_v41, %v281_v44 }
  0xf0   : > { %v283_v49 = vmul.f32 0.00390625, %v278_v45  ;;  %v289_v50 = vpop.xlane.xlu0 %288 }
  0xf1   : > { %v310_v53 = vsel %vm308_vm0, %v305_v46, 0.0  ;;  %v340_v54 = vmul.f32 %v297_v41, %v289_v50  ;;  %v457_v50 = vld [vmem:[#allocation6 + $0x20] sm:$0xff] }
  0xf2   : > { %v311_v55 = vadd.f32 %v310_v53, %v309_v51  ;;  %v307_v56 = vmul.f32 %v299_v48, %v283_v49  ;;  %v459_v51 = vld [vmem:[#allocation6 + $0x30] sm:$0xff] }
  0xf3   : > { %v344_v57 = vsel %vm308_vm0, %v340_v54, 0.0  ;;  %v295_v59 = vpop.xlane.xlu1 %294  ;;  %v902_v53 = vpack.c.bf16 %v459_v51, %v457_v50  ;;  %v523_v54 = vld [vmem:[#allocation6 + $0x230] sm:$0xff]  ;;  %v542_v50 = vld [vmem:[#allocation6 + $0x2c8] sm:$0xff] }
  0xf4   : > { %v313_v60 = vadd.f32 %v312_v58, %v311_v55  ;;  %v292_v61 = vpop.xlane.xlu0 %291  ;;  %v314_v62 = vsel %vm308_vm0, %v307_v56, 0.0  ;;  %v342_v63 = vmul.f32 %v299_v48, %v295_v59  ;;  %v345_v8 = vadd.f32 %v344_v57, %v343_v3  ;;  %v462_v55 = vld [vmem:[#allocation6 + $0x48] sm:$0xff]  ;;  %v464_v56 = vld [vmem:[#allocation6 + $0x58] sm:$0xff]  ;;  %v525_v3 = vld [vmem:[#allocation6 + $0x240] sm:$0xff] }
  0xf5   : > { %v341_v7 = vmul.f32 %v298_v42, %v292_v61  ;;  %v966_v57 = vpack.c.bf16 %v523_v54, %v521_v52  ;;  %v904_v58 = vpack.c.bf16 %v464_v56, %v462_v55  ;;  %v526_v59 = vld [vmem:[#allocation6 + $0x248] sm:$0xff]  ;;  %903 = vmatpush1.bf16.msra.mxu1 %v902_v53  ;;  %v544_v52 = vld [vmem:[#allocation6 + $0x2d8] sm:$0xff]  ;;  %v477_v53 = vld [vmem:[#allocation6 + $0xc0] sm:$0xff] }
  0xf6   : > { %v315_v9 = vadd.f32 %v314_v62, %v313_v60  ;;  %v348_v13 = vsel %vm308_vm0, %v342_v63, 0.0  ;;  %v528_v60 = vld [vmem:[#allocation6 + $0x258] sm:$0xff]  ;;  %v461_v62 = vld [vmem:[#allocation6 + $0x40] sm:$0xff]  ;;  %v463_v63 = vld [vmem:[#allocation6 + $0x50] sm:$0xff]  ;;  %v984_v55 = vpack.c.bf16 %v544_v52, %v542_v50 }
  0xf7   : > { %v346_v12 = vsel %vm308_vm0, %v341_v7, 0.0  ;;  %v968_v61 = vpack.c.bf16 %v528_v60, %v526_v59  ;;  %967 = vmatpush1.bf16.msra.mxu0 %v966_v57  ;;  %905 = vmatprep.subr.bf16.mxu1 %v904_v58  ;;  %v906_v7 = vpack.c.bf16 %v463_v63, %v461_v62  ;;  %v479_v54 = vld [vmem:[#allocation6 + $0xd0] sm:$0xff]  ;;  %v541_v57 = vld [vmem:[#allocation6 + $0x2c0] sm:$0xff]  ;;  %v482_v60 = vld [vmem:[#allocation6 + $0xe8] sm:$0xff] }
  0xf8   : > { %v347_v14 = vadd.f32 %v346_v12, %v345_v8  ;;  %v316_v15 = vrot.slane %v315_v9, 4  ;;  %v527_v8 = vld [vmem:[#allocation6 + $0x250] sm:$0xff]  ;;  %v466_v12 = vld [vmem:[#allocation6 + $0x68] sm:$0xff]  ;;  %v922_v56 = vpack.c.bf16 %v479_v54, %v477_v53  ;;  %v500_v53 = vld [vmem:[#allocation6 + $0x178] sm:$0xff] }
  0xf9   : > { %969 = vmatprep.subr.bf16.mxu0 %v968_v61  ;;  %907 = vmatpush1.bf16.msra.mxu1 %v906_v7  ;;  %v543_v58 = vld [vmem:[#allocation6 + $0x2d0] sm:$0xff]  ;;  %v484_v61 = vld [vmem:[#allocation6 + $0xf8] sm:$0xff]  ;;  %v546_v62 = vld [vmem:[#allocation6 + $0x2e8] sm:$0xff] }
  0xfa   : > { %v317_v16 = vadd.f32 %v316_v15, %v315_v9  ;;  %v349_v17 = vadd.f32 %v348_v13, %v347_v14  ;;  %v970_v9 = vpack.c.bf16 %v527_v8, %v525_v3  ;;  %v468_v13 = vld [vmem:[#allocation6 + $0x78] sm:$0xff]  ;;  %v530_v14 = vld [vmem:[#allocation6 + $0x268] sm:$0xff]  ;;  %v986_v59 = vpack.c.bf16 %v543_v58, %v541_v57  ;;  %v481_v7 = vld [vmem:[#allocation6 + $0xe0] sm:$0xff] }
  0xfb   : > { %v908_v15 = vpack.c.bf16 %v468_v13, %v466_v12  ;;  %v924_v63 = vpack.c.bf16 %v484_v61, %v482_v60  ;;  %v548_v3 = vld [vmem:[#allocation6 + $0x2f8] sm:$0xff]  ;;  %v483_v8 = vld [vmem:[#allocation6 + $0xf0] sm:$0xff]  ;;  %v545_v13 = vld [vmem:[#allocation6 + $0x2e0] sm:$0xff] }
  0xfc   : > { %v318_v18 = vrot.slane %v317_v16, 2  ;;  %v350_v19 = vrot.slane %v349_v17, 4  ;;  %971 = vmatpush1.bf16.msra.mxu0 %v970_v9  ;;  %v988_v9 = vpack.c.bf16 %v548_v3, %v546_v62  ;;  %v926_v12 = vpack.c.bf16 %v483_v8, %v481_v7  ;;  %v559_v50 = vld [vmem:[#allocation6 + $0x350] sm:$0xff]  ;;  %v498_v52 = vld [vmem:[#allocation6 + $0x168] sm:$0xff]  ;;  %v497_v57 = vld [vmem:[#allocation6 + $0x160] sm:$0xff] }
  0xfd   : > { %909 = vmatprep.subr.bf16.mxu1 %v908_v15  ;;  %v562_v54 = vld [vmem:[#allocation6 + $0x368] sm:$0xff]  ;;  %v499_v58 = vld [vmem:[#allocation6 + $0x170] sm:$0xff]  ;;  %v561_v61 = vld [vmem:[#allocation6 + $0x360] sm:$0xff] }
  0xfe   : > { %v319_v20 = vadd.f32 %v318_v18, %v317_v16  ;;  %v351_v21 = vadd.f32 %v350_v19, %v349_v17  ;;  %v532_v16 = vld [vmem:[#allocation6 + $0x278] sm:$0xff]  ;;  %v465_v17 = vld [vmem:[#allocation6 + $0x60] sm:$0xff]  ;;  %v467_v18 = vld [vmem:[#allocation6 + $0x70] sm:$0xff]  ;;  %v942_v60 = vpack.c.bf16 %v499_v58, %v497_v57 }
  0xff   : > { %v972_v19 = vpack.c.bf16 %v532_v16, %v530_v14  ;;  %v547_v14 = vld [vmem:[#allocation6 + $0x2f0] sm:$0xff]  ;;  %v486_v16 = vld [vmem:[#allocation6 + $0x108] sm:$0xff]  ;;  %v504_v7 = vld [vmem:[#allocation6 + $0x198] sm:$0xff] }
 0x100   : > { %v320_v22 = vrot.slane %v319_v20, 1  ;;  %v352_v23 = vrot.slane %v351_v21, 2  ;;  %v990_v15 = vpack.c.bf16 %v547_v14, %v545_v13  ;;  %v563_v62 = vld [vmem:[#allocation6 + $0x370] sm:$0xff]  ;;  %v502_v3 = vld [vmem:[#allocation6 + $0x188] sm:$0xff]  ;;  %v501_v13 = vld [vmem:[#allocation6 + $0x180] sm:$0xff] }
 0x101   : > { %973 = vmatprep.subr.bf16.mxu0 %v972_v19  ;;  %v566_v8 = vld [vmem:[#allocation6 + $0x388] sm:$0xff]  ;;  %v503_v14 = vld [vmem:[#allocation6 + $0x190] sm:$0xff] }
 0x102   : > { %v353_v24 = vadd.f32 %v352_v23, %v351_v21  ;;  %v321_v26 = vadd.f32 %v320_v22, %v319_v20  ;;  %v910_v20 = vpack.c.bf16 %v467_v18, %v465_v17  ;;  %v529_v21 = vld [vmem:[#allocation6 + $0x260] sm:$0xff]  ;;  %v531_v22 = vld [vmem:[#allocation6 + $0x270] sm:$0xff]  ;;  %v488_v17 = vld [vmem:[#allocation6 + $0x118] sm:$0xff] }
 0x103   : > { %v974_v23 = vpack.c.bf16 %v531_v22, %v529_v21  ;;  %v550_v18 = vld [vmem:[#allocation6 + $0x308] sm:$0xff]  ;;  %v928_v19 = vpack.c.bf16 %v488_v17, %v486_v16  ;;  %v485_v21 = vld [vmem:[#allocation6 + $0x100] sm:$0xff]  ;;  %v487_v22 = vld [vmem:[#allocation6 + $0x110] sm:$0xff]  ;;  %v946_v16 = vpack.c.bf16 %v503_v14, %v501_v13 }
 0x104   : > { %v354_v25 = vrot.slane %v353_v24, 1  ;;  %v322_v29 = vmax.f32 %v321_v26, 0.0  ;;  %911 = vmatpush1.bf16.msra.mxu1 %v910_v20  ;;  %v534_v26 = vld [vmem:[#allocation6 + $0x288] sm:$0xff]  ;;  %v552_v20 = vld [vmem:[#allocation6 + $0x318] sm:$0xff]  ;;  %v565_v17 = vld [vmem:[#allocation6 + $0x380] sm:$0xff] }
 0x105   : > { %975 = vmatpush1.bf16.msra.mxu0 %v974_v23  ;;  %v992_v23 = vpack.c.bf16 %v552_v20, %v550_v18  ;;  %v567_v18 = vld [vmem:[#allocation6 + $0x390] sm:$0xff] }
 0x106   : > { %v355_v27 = vadd.f32 %v354_v25, %v353_v24  ;;  %v323_v38 = vmul.f32 %v322_v29, %v300_v31  ;;  %v324_v41 = vmul.f32 %v322_v29, %v301_v30  ;;  %v325_v42 = vmul.f32 %v322_v29, %v302_v34  ;;  %v470_v24 = vld [vmem:[#allocation6 + $0x88] sm:$0xff]  ;;  %v472_v25 = vld [vmem:[#allocation6 + $0x98] sm:$0xff] }
 0x107   : > { %v326_v47 = vmul.f32 %v322_v29, %v303_v43  ;;  %v469_v29 = vld [vmem:[#allocation6 + $0x80] sm:$0xff]  ;;  %v1010_v20 = vpack.c.bf16 %v567_v18, %v565_v17 }
 0x108   : > { %v356_v28 = vmax.f32 %v355_v27, 0.0  ;;  %v327_v40 = vsel %vm308_vm0, %v323_v38, 0.0  ;;  %v330_v44 = vsel %vm308_vm0, %v324_v41, 0.0  ;;  %v333_v45 = vsel %vm308_vm0, %v325_v42, 0.0  ;;  %v538_v38 = vld [vmem:[#allocation6 + $0x2a8] sm:$0xff]  ;;  %v473_v41 = vld [vmem:[#allocation6 + $0xa0] sm:$0xff] }
 0x109   : > { %v336_v49 = vsel %vm308_vm0, %v326_v47, 0.0  ;;  %v912_v27 = vpack.c.bf16 %v472_v25, %v470_v24  ;;  %v475_v42 = vld [vmem:[#allocation6 + $0xb0] sm:$0xff]  ;;  %v930_v24 = vpack.c.bf16 %v487_v22, %v485_v21  ;;  %v549_v25 = vld [vmem:[#allocation6 + $0x300] sm:$0xff]  ;;  %v508_v21 = vld [vmem:[#allocation6 + $0x1b8] sm:$0xff] }
 0x10a   : > { %v358_v32 = vmul.f32 %v356_v28, %v301_v30  ;;  %v357_v33 = vmul.f32 %v356_v28, %v300_v31  ;;  %v359_v37 = vmul.f32 %v356_v28, %v302_v34  ;;  %v360_v46 = vmul.f32 %v356_v28, %v303_v43  ;;  %v536_v28 = vld [vmem:[#allocation6 + $0x298] sm:$0xff]  ;;  %v471_v30 = vld [vmem:[#allocation6 + $0x90] sm:$0xff]  ;;  %v570_v22 = vld [vmem:[#allocation6 + $0x3a8] sm:$0xff] }
 0x10b   : > { %v976_v31 = vpack.c.bf16 %v536_v28, %v534_v26  ;;  %v535_v34 = vld [vmem:[#allocation6 + $0x290] sm:$0xff]  ;;  %913 = vmatprep.subr.bf16.mxu1 %v912_v27  ;;  %v490_v28 = vld [vmem:[#allocation6 + $0x128] sm:$0xff] }
 0x10c   : > { %v364_v35 = vsel %vm308_vm0, %v358_v32, 0.0  ;;  %v361_v36 = vsel %vm308_vm0, %v357_v33, 0.0  ;;  %v367_v39 = vsel %vm308_vm0, %v359_v37, 0.0  ;;  %v370_v48 = vsel %vm308_vm0, %v360_v46, 0.0  ;;  %v533_v33 = vld [vmem:[#allocation6 + $0x280] sm:$0xff]  ;;  %v476_v37 = vld [vmem:[#allocation6 + $0xb8] sm:$0xff] }
 0x10d   : > { %365 = vadd.xlane.f32.xlu1 %v364_v35  ;;  %362 = vadd.xlane.f32.xlu0 %v361_v36  ;;  %v914_v32 = vpack.c.bf16 %v471_v30, %v469_v29  ;;  %v978_v35 = vpack.c.bf16 %v535_v34, %v533_v33  ;;  %v474_v36 = vld [vmem:[#allocation6 + $0xa8] sm:$0xff]  ;;  %v539_v46 = vld [vmem:[#allocation6 + $0x2b0] sm:$0xff]  ;;  %v492_v29 = vld [vmem:[#allocation6 + $0x138] sm:$0xff] }
 0x10e   : > { %977 = vmatprep.subr.bf16.mxu0 %v976_v31  ;;  %v551_v26 = vld [vmem:[#allocation6 + $0x310] sm:$0xff]  ;;  %v554_v30 = vld [vmem:[#allocation6 + $0x328] sm:$0xff]  ;;  %v932_v31 = vpack.c.bf16 %v492_v29, %v490_v28  ;;  %v489_v33 = vld [vmem:[#allocation6 + $0x120] sm:$0xff] }
 0x10f   : > { %915 = vmatpush1.bf16.msra.mxu1 %v914_v32  ;;  %979 = vmatpush1.bf16.msra.mxu0 %v978_v35  ;;  %v994_v27 = vpack.c.bf16 %v551_v26, %v549_v25  ;;  %v556_v32 = vld [vmem:[#allocation6 + $0x338] sm:$0xff]  ;;  %v491_v34 = vld [vmem:[#allocation6 + $0x130] sm:$0xff]  ;;  %v505_v26 = vld [vmem:[#allocation6 + $0x1a0] sm:$0xff] }
 0x110   : > { %v996_v35 = vpack.c.bf16 %v556_v32, %v554_v30  ;;  %v569_v28 = vld [vmem:[#allocation6 + $0x3a0] sm:$0xff]  ;;  %v571_v30 = vld [vmem:[#allocation6 + $0x3b0] sm:$0xff]  ;;  %v512_v32 = vld [vmem:[#allocation6 + $0x1d8] sm:$0xff] }
 0x111   : > { %368 = vadd.xlane.f32.xlu1 %v367_v39  ;;  %328 = vadd.xlane.f32.xlu0 %v327_v40  ;;  %v916_v39 = vpack.c.bf16 %v476_v37, %v474_v36  ;;  %v540_v40 = vld [vmem:[#allocation6 + $0x2b8] sm:$0xff]  ;;  %v934_v36 = vpack.c.bf16 %v491_v34, %v489_v33  ;;  %v553_v37 = vld [vmem:[#allocation6 + $0x320] sm:$0xff]  ;;  %v1014_v33 = vpack.c.bf16 %v571_v30, %v569_v28 }
 0x112   : > { %v980_v43 = vpack.c.bf16 %v540_v40, %v538_v38  ;;  %v555_v38 = vld [vmem:[#allocation6 + $0x330] sm:$0xff]  ;;  %v494_v40 = vld [vmem:[#allocation6 + $0x148] sm:$0xff] }
 0x113   : > { %917 = vmatprep.subr.bf16.mxu1 %v916_v39  ;;  %v998_v39 = vpack.c.bf16 %v555_v38, %v553_v37  ;;  %v509_v37 = vld [vmem:[#allocation6 + $0x1c0] sm:$0xff] }
 0x114   : > { %981 = vmatprep.subr.bf16.mxu0 %v980_v43 }
 0x115   : > { %331 = vadd.xlane.f32.xlu1 %v330_v44  ;;  %334 = vadd.xlane.f32.xlu0 %v333_v45  ;;  %v918_v44 = vpack.c.bf16 %v475_v42, %v473_v41  ;;  %v537_v45 = vld [vmem:[#allocation6 + $0x2a0] sm:$0xff]  ;;  %v496_v41 = vld [vmem:[#allocation6 + $0x158] sm:$0xff]  ;;  %v558_v42 = vld [vmem:[#allocation6 + $0x348] sm:$0xff] }
 0x116   : > { %v982_v47 = vpack.c.bf16 %v539_v46, %v537_v45  ;;  %v936_v43 = vpack.c.bf16 %v496_v41, %v494_v40  ;;  %v493_v45 = vld [vmem:[#allocation6 + $0x140] sm:$0xff]  ;;  %v495_v46 = vld [vmem:[#allocation6 + $0x150] sm:$0xff] }
 0x117   : > { %919 = vmatpush1.bf16.msra.mxu1 %v918_v44  ;;  %v560_v44 = vld [vmem:[#allocation6 + $0x358] sm:$0xff]  ;;  %v573_v40 = vld [vmem:[#allocation6 + $0x3c0] sm:$0xff]  ;;  %v575_v41 = vld [vmem:[#allocation6 + $0x3d0] sm:$0xff] }
 0x118   : > { %983 = vmatpush1.bf16.msra.mxu0 %v982_v47  ;;  %v1000_v47 = vpack.c.bf16 %v560_v44, %v558_v42  ;;  %v514_v42 = vld [vmem:[#allocation6 + $0x1e8] sm:$0xff] }
 0x119   : > { %371 = vadd.xlane.f32.xlu1 %v370_v48  ;;  %337 = vadd.xlane.f32.xlu0 %v336_v49  ;;  %v478_v48 = vld [vmem:[#allocation6 + $0xc8] sm:$0xff]  ;;  %v480_v49 = vld [vmem:[#allocation6 + $0xd8] sm:$0xff] }
 0x11a   : > { %v920_v51 = vpack.c.bf16 %v480_v49, %v478_v48  ;;  %985 = vmatprep.subr.bf16.mxu0 %v984_v55  ;;  %v938_v48 = vpack.c.bf16 %v495_v46, %v493_v45  ;;  %v557_v49 = vld [vmem:[#allocation6 + $0x340] sm:$0xff]  ;;  %v940_v55 = vpack.c.bf16 %v500_v53, %v498_v52  ;;  %v578_v44 = vld [vmem:[#allocation6 + $0x3e8] sm:$0xff]  ;;  %v580_v46 = vld [vmem:[#allocation6 + $0x3f8] sm:$0xff] }
 0x11b   : > { %v577_v52 = vld [vmem:[#allocation6 + $0x3e0] sm:$0xff]  ;;  %v579_v53 = vld [vmem:[#allocation6 + $0x3f0] sm:$0xff] }
 0x11c   : > { %921 = vmatprep.subr.bf16.mxu1 %v920_v51  ;;  %987 = vmatpush1.bf16.msra.mxu0 %v986_v59  ;;  %v1002_v51 = vpack.c.bf16 %v559_v50, %v557_v49  ;;  %v513_v49 = vld [vmem:[#allocation6 + $0x1e0] sm:$0xff]  ;;  %v515_v50 = vld [vmem:[#allocation6 + $0x1f0] sm:$0xff] }
 0x11d   : > { %923 = vmatpush1.bf16.msra.mxu1 %v922_v56  ;;  %989 = vmatprep.subr.bf16.mxu0 %v988_v9  ;;  %v564_v56 = vld [vmem:[#allocation6 + $0x378] sm:$0xff]  ;;  %v944_v9 = vpack.c.bf16 %v504_v7, %v502_v3 }
 0x11e   : > { %925 = vmatprep.subr.bf16.mxu1 %v924_v63  ;;  %v1004_v59 = vpack.c.bf16 %v564_v56, %v562_v54  ;;  %v1006_v63 = vpack.c.bf16 %v563_v62, %v561_v61  ;;  %v958_v54 = vpack.c.bf16 %v515_v50, %v513_v49 }
 0x120   : > { %991 = vmatpush1.bf16.msra.mxu0 %v990_v15 }
 0x121   : > { %927 = vmatpush1.bf16.msra.mxu1 %v926_v12  ;;  %993 = vmatprep.subr.bf16.mxu0 %v992_v23  ;;  %v568_v12 = vld [vmem:[#allocation6 + $0x398] sm:$0xff] }
 0x122   : > { %929 = vmatprep.subr.bf16.mxu1 %v928_v19  ;;  %v1008_v15 = vpack.c.bf16 %v568_v12, %v566_v8  ;;  %v506_v19 = vld [vmem:[#allocation6 + $0x1a8] sm:$0xff]  ;;  %v572_v23 = vld [vmem:[#allocation6 + $0x3b8] sm:$0xff] }
 0x123   : > { %v1012_v25 = vpack.c.bf16 %v572_v23, %v570_v22 }
 0x124   : > { %995 = vmatpush1.bf16.msra.mxu0 %v994_v27  ;;  %v507_v27 = vld [vmem:[#allocation6 + $0x1b0] sm:$0xff] }
 0x125   : > { %931 = vmatpush1.bf16.msra.mxu1 %v930_v24  ;;  %997 = vmatprep.subr.bf16.mxu0 %v996_v35  ;;  %v948_v24 = vpack.c.bf16 %v508_v21, %v506_v19  ;;  %v950_v29 = vpack.c.bf16 %v507_v27, %v505_v26  ;;  %v574_v35 = vld [vmem:[#allocation6 + $0x3c8] sm:$0xff] }
 0x126   : > { %933 = vmatprep.subr.bf16.mxu1 %v932_v31  ;;  %v510_v31 = vld [vmem:[#allocation6 + $0x1c8] sm:$0xff] }
 0x127   : > { %v952_v34 = vpack.c.bf16 %v512_v32, %v510_v31 }
 0x128   : > { %999 = vmatpush1.bf16.msra.mxu0 %v998_v39  ;;  %v511_v39 = vld [vmem:[#allocation6 + $0x1d0] sm:$0xff] }
 0x129   : > { %935 = vmatpush1.bf16.msra.mxu1 %v934_v36  ;;  %1001 = vmatprep.subr.bf16.mxu0 %v1000_v47  ;;  %v576_v36 = vld [vmem:[#allocation6 + $0x3d8] sm:$0xff]  ;;  %v954_v45 = vpack.c.bf16 %v511_v39, %v509_v37  ;;  %v1018_v47 = vpack.c.bf16 %v575_v41, %v573_v40 }
 0x12a   : > { %937 = vmatprep.subr.bf16.mxu1 %v936_v43  ;;  %v1016_v38 = vpack.c.bf16 %v576_v36, %v574_v35  ;;  %v516_v43 = vld [vmem:[#allocation6 + $0x1f8] sm:$0xff] }
 0x12c   : > { %1003 = vmatpush1.bf16.msra.mxu0 %v1002_v51  ;;  %v1020_v51 = vpack.c.bf16 %v580_v46, %v578_v44 }
 0x12d   : > { %939 = vmatpush1.bf16.msra.mxu1 %v938_v48  ;;  %1005 = vmatprep.subr.bf16.mxu0 %v1004_v59  ;;  %v956_v48 = vpack.c.bf16 %v516_v43, %v514_v42 }
 0x12e   : > { %941 = vmatprep.subr.bf16.mxu1 %v940_v55  ;;  %v1022_v55 = vpack.c.bf16 %v579_v53, %v577_v52 }
 0x130   : > { %1007 = vmatpush1.bf16.msra.mxu0 %v1006_v63 }
 0x131   : > { %943 = vmatpush1.bf16.msra.mxu1 %v942_v60  ;;  %1009 = vmatprep.subr.bf16.mxu0 %v1008_v15 }
 0x132   : > { %945 = vmatprep.subr.bf16.mxu1 %v944_v9 }
 0x134   : > { %1011 = vmatpush1.bf16.msra.mxu0 %v1010_v20 }
 0x135   : > { %947 = vmatpush1.bf16.msra.mxu1 %v946_v16  ;;  %1013 = vmatprep.subr.bf16.mxu0 %v1012_v25 }
 0x136   : > { %949 = vmatprep.subr.bf16.mxu1 %v948_v24 }
 0x138   : > { %1015 = vmatpush1.bf16.msra.mxu0 %v1014_v33 }
 0x139   : > { %951 = vmatpush1.bf16.msra.mxu1 %v950_v29  ;;  %1017 = vmatprep.subr.bf16.mxu0 %v1016_v38 }
 0x13a   : > { %953 = vmatprep.subr.bf16.mxu1 %v952_v34 }
 0x13c   : > { %1019 = vmatpush1.bf16.msra.mxu0 %v1018_v47 }
 0x13d   : > { %955 = vmatpush1.bf16.msra.mxu1 %v954_v45  ;;  %1021 = vmatprep.subr.bf16.mxu0 %v1020_v51 }
 0x13e   : > { %957 = vmatprep.subr.bf16.mxu1 %v956_v48 }
 0x140   : > { %1023 = vmatpush1.bf16.msra.mxu0 %v1022_v55 }
 0x141   : > { %959 = vmatpush1.bf16.msra.mxu1 %v958_v54 }
 0x19a   : > { %v366_v56 = vpop.xlane.xlu1 %365  ;;  %v363_v57 = vpop.xlane.xlu0 %362 }
 0x19e   : > { %v369_v58 = vpop.xlane.xlu1 %368  ;;  %v329_v59 = vpop.xlane.xlu0 %328 }
 0x19f   : > { %v373_v60 = vadd.f32 %v363_v57, %v329_v59 }
 0x1a1   : > { %v879_v61 = vmul.f32 -1.442695, %v373_v60 }
 0x1a2   : > { %v332_v62 = vpop.xlane.xlu1 %331  ;;  %v335_v63 = vpop.xlane.xlu0 %334 }
 0x1a3   : > { %1087 = vpow2.f32 %v879_v61  ;;  %v374_v3 = vadd.f32 %v366_v56, %v332_v62  ;;  %v375_v7 = vadd.f32 %v369_v58, %v335_v63 }
 0x1a5   : > { %v880_v8 = vmul.f32 -1.442695, %v374_v3  ;;  %v881_v9 = vmul.f32 -1.442695, %v375_v7 }
 0x1a6   : > { %v372_v12 = vpop.xlane.xlu1 %371  ;;  %v338_v13 = vpop.xlane.xlu0 %337 }
 0x1a7   : > { %1089 = vpow2.f32 %v880_v8  ;;  %v376_v14 = vadd.f32 %v372_v12, %v338_v13 }
 0x1a8   : > { %1091 = vpow2.f32 %v881_v9 }
 0x1a9   : > { %v882_v15 = vmul.f32 -1.442695, %v376_v14 }
 0x1ab   : > { %1093 = vpow2.f32 %v882_v15 }
 0x1ad   : > { %v1088_v16 = vpop.eup %1087 }
 0x1ae   : > { %v389_v17 = vadd.f32 1.0, %v1088_v16 }
 0x1b0   : > { %1095 = vrcp.f32 %v389_v17 }
 0x1b1   : > { %v1090_v18 = vpop.eup %1089 }
 0x1b2   : > { %v1092_v19 = vpop.eup %1091  ;;  %v390_v20 = vadd.f32 1.0, %v1090_v18 }
 0x1b3   : > { %v391_v21 = vadd.f32 1.0, %v1092_v19 }
 0x1b4   : > { %1097 = vrcp.f32 %v390_v20  ;;  %v724_v20 = vstv %s723_s27 }
 0x1b5   : > { %v1094_v22 = vpop.eup %1093  ;;  %1099 = vrcp.f32 %v391_v21 }
 0x1b6   : > { %v392_v23 = vadd.f32 1.0, %v1094_v22 }
 0x1b8   : > { %1101 = vrcp.f32 %v392_v23 }
 0x1ba   : > { %v1096_v24 = vpop.eup %1095 }
 0x1bb   : > { %v1513_v27 = vmul.f32 %v1096_v24, %v1444_v2  ;;  %v1516_v28 = vmul.f32 %v1096_v24, %v1448_v4 }
 0x1be   : > { %v1098_v25 = vpop.eup %1097 }
 0x1bf   : > { %v1100_v26 = vpop.eup %1099  ;;  %v1519_v29 = vmul.f32 %v1098_v25, %v1450_v5  ;;  %v1522_v30 = vmul.f32 %v1098_v25, %v1452_v6 }
 0x1c0   : > { %v1525_v31 = vmul.f32 %v1100_v26, %v1440_v0  ;;  %v1528_v32 = vmul.f32 %v1100_v26, %v1442_v1 }
 0x1c1   : > { %v418_v33 = vadd.f32 %v1522_v30, %v1516_v28  ;;  %v409_v34 = vadd.f32 %v1519_v29, %v1513_v27 }
 0x1c2   : > { %v1102_v35 = vpop.eup %1101  ;;  %v439_v40 = vmax.f32 %v1516_v28, %v1528_v32  ;;  %v430_v41 = vmax.f32 %v1513_v27, %v1525_v31 }
 0x1c3   : > { %v1535_v36 = vmul.f32 %v1102_v35, %v1460_v10  ;;  %v1538_v37 = vmul.f32 %v1102_v35, %v1462_v11  ;;  %v419_v38 = vadd.f32 %v418_v33, %v1528_v32  ;;  %v410_v39 = vadd.f32 %v409_v34, %v1525_v31 }
 0x1c5   : > { %v420_v42 = vadd.f32 %v419_v38, %v1538_v37  ;;  %v440_v43 = vmax.f32 %v1522_v30, %v1538_v37  ;;  %v411_v44 = vadd.f32 %v410_v39, %v1535_v36  ;;  %v431_v45 = vmax.f32 %v1519_v29, %v1535_v36 }
 0x1c7   : > { %v421_v46 = vrot.slane %v420_v42, 4  ;;  %v441_v47 = vmax.f32 %v439_v40, %v440_v43  ;;  %v412_v48 = vrot.slane %v411_v44, 4  ;;  %v432_v49 = vmax.f32 %v430_v41, %v431_v45 }
 0x1c8   : > { %v739_v40 = vlaneseq }
 0x1c9   : > { %v422_v50 = vadd.f32 %v421_v46, %v420_v42  ;;  %v442_v51 = vrot.slane %v441_v47, 4  ;;  %v413_v52 = vadd.f32 %v412_v48, %v411_v44  ;;  %v433_v53 = vrot.slane %v432_v49, 4 }
 0x1ca   : > { %v740_v42 = vshrl.u32 %v739_v40, 7 }
 0x1cb   : > { %v423_v54 = vrot.slane %v422_v50, 2  ;;  %v443_v55 = vmax.f32 %v441_v47, %v442_v51  ;;  %v414_v56 = vrot.slane %v413_v52, 2  ;;  %v434_v57 = vmax.f32 %v432_v49, %v433_v53 }
 0x1cc   : > { %v741_v43 = vsub.s32 0, %v740_v42 }
 0x1cd   : > { %v424_v58 = vadd.f32 %v423_v54, %v422_v50  ;;  %v444_v59 = vrot.slane %v443_v55, 2  ;;  %v415_v60 = vadd.f32 %v414_v56, %v413_v52  ;;  %v435_v61 = vrot.slane %v434_v57, 2 }
 0x1cf   : > { %v425_v62 = vrot.slane %v424_v58, 1  ;;  %v445_v63 = vmax.f32 %v443_v55, %v444_v59  ;;  %v416_v3 = vrot.slane %v415_v60, 1  ;;  %v436_v7 = vmax.f32 %v434_v57, %v435_v61 }
 0x1d1   : > { %v426_v8 = vadd.f32 %v425_v62, %v424_v58  ;;  %v446_v9 = vrot.slane %v445_v63, 1  ;;  %v417_v12 = vadd.f32 %v416_v3, %v415_v60  ;;  %v437_v13 = vrot.slane %v436_v7, 1 }
 0x1d3   : > { %v429_v14 = vmul.f32 0.03125, %v426_v8  ;;  %v447_v15 = vmax.f32 %v445_v63, %v446_v9  ;;  %v428_v16 = vmul.f32 0.03125, %v417_v12  ;;  %v438_v17 = vmax.f32 %v436_v7, %v437_v13 }
 0x1d5   : > { %883 = vmatprep.mubr.msk.f32.mxu1 %vm448_vm1, %v429_v14  ;;  %885 = vmatprep.mubr.msk.f32.mxu0 %vm448_vm1, %v447_v15 }
 0x1d6   : > { %884 = vmatmul.mubr.msk.f32.vlgmr.msra.gmra.mrb[0].mxu1 %vm448_vm1, %v428_v16  ;;  %886 = vmatmul.mubr.msk.f32.vlgmr.msra.gmra.mrb[0].mxu0 %vm448_vm1, %v438_v17 }
 0x2a9   : > { %v647_v18 = vpop.f32.mrb[0].mxu1  ;;  %v718_v19 = vpop.f32.mrb[0].mxu0 }
 0x2aa   : > { %v719_v21 = vadd.f32 %v718_v19, %v647_v18  ;;  %v649_v22 = vpop.f32.mrb[1].mxu1  ;;  %v720_v23 = vpop.f32.mrb[1].mxu0 }
 0x2ab   : > { %v721_v24 = vadd.f32 %v720_v23, %v649_v22 }
 0x2ac   : > { %v725_v25 = vadd.f32 %v724_v20, %v719_v21 }
 0x2ad   : > { %v726_v26 = vadd.f32 %v724_v20, %v721_v24 }
 0x2ae   : > { %v887_v33 = vmul.f32 -1.442695, %v725_v25 }
 0x2af   : > { %v888_v34 = vmul.f32 -1.442695, %v726_v26 }
 0x2b0   : > { %1103 = vpow2.f32 %v887_v33 }
 0x2b1   : > { %1105 = vpow2.f32 %v888_v34 }
 0x2ba   : > { %v1104_v35 = vpop.eup %1103 }
 0x2bb   : > { %v1106_v38 = vpop.eup %1105  ;;  %v733_v39 = vadd.f32 1.0, %v1104_v35 }
 0x2bc   : > { %v734_v41 = vadd.f32 1.0, %v1106_v38 }
 0x2bd   : > { %1107 = vrcp.f32 %v733_v39 }
 0x2be   : > { %1109 = vrcp.f32 %v734_v41 }
 0x2c7   : > { %v1108_v44 = vpop.eup %1107 }
 0x2c8   : > { %v1110_v45 = vpop.eup %1109  ;;  %v742_v46 = vrot.slane %v1108_v44, %v741_v43 }
 0x2c9   : > { %v746_v47 = vrot.slane %v1110_v45, %v741_v43 }
 0x2ca   : > { %v747_v48 = vmul.f32 %v742_v46, %v1513_v27  ;;  %v749_v49 = vmul.f32 %v742_v46, %v1519_v29  ;;  %v751_v50 = vmul.f32 %v742_v46, %v1525_v31  ;;  %v753_v51 = vmul.f32 %v742_v46, %v1535_v36 }
 0x2cb   : > { %v748_v52 = vmul.f32 %v746_v47, %v1516_v28  ;;  %v750_v53 = vmul.f32 %v746_v47, %v1522_v30  ;;  %v752_v54 = vmul.f32 %v746_v47, %v1528_v32  ;;  %v754_v55 = vmul.f32 %v746_v47, %v1538_v37 }
 0x2cc   : > { %v755_v56 = vadd.f32 %v747_v48, %v1444_v2  ;;  %v757_v57 = vadd.f32 %v749_v49, %v1450_v5  ;;  %v759_v27 = vadd.f32 %v751_v50, %v1440_v0  ;;  %v761_v29 = vadd.f32 %v753_v51, %v1460_v10 }
 0x2cd   : > { %v756_v28 = vadd.f32 %v748_v52, %v1448_v4  ;;  %v758_v2 = vadd.f32 %v750_v53, %v1452_v6  ;;  %v760_v5 = vadd.f32 %v752_v54, %v1442_v1  ;;  %v762_v0 = vadd.f32 %v754_v55, %v1462_v11 }
 0x2ce   : > { %763 = vst [vmem:[%s258_s18] sm:$0xff] %v755_v56  ;;  %765 = vst [vmem:[%s258_s18 + $0x10] sm:$0xff] %v757_v57 }
 0x2cf   : > { %767 = vst [vmem:[%s258_s18 + $0x20] sm:$0xff] %v759_v27  ;;  %769 = vst [vmem:[%s258_s18 + $0x30] sm:$0xff] %v761_v29 }
 0x2d0   : > { %764 = vst [vmem:[%s258_s18 + $0x8] sm:$0xff] %v756_v28  ;;  %766 = vst [vmem:[%s258_s18 + $0x18] sm:$0xff] %v758_v2 }
 0x2d1   : > { %768 = vst [vmem:[%s258_s18 + $0x28] sm:$0xff] %v760_v5  ;;  %770 = vst [vmem:[%s258_s18 + $0x38] sm:$0xff] %v762_v0 }
 0x2d2   : > { %1182 = shalt.err (!%p1179_p7)
}
 0x2d3   : > { %s1183_s29 = scalar_lea.hbm %s1570_s7, 1024  ;;  %s1187_s8 = scalar_lea.hbm %s1625_s5, 2048 }
 0x2d4   : > { %p1184_p9 = scmp.ne.s32.totalorder %s1570_s7, %s1183_s29  ;;  %p1188_p5 = scmp.lt.u32.totalorder %s1570_s7, %s1625_s5 }
 0x2d5   : > { %p1189_p11 = scmp.lt.u32.totalorder %s1187_s8, %s1183_s29  ;;  %p1191_p4 = scmp.lt.u32.totalorder %s1183_s29, %s1570_s7 }
 0x2d6   : > { %p1185_p1 = pnand %p1184_p9, %p1375_p12 }
 0x2d7   : > { %p1190_p2 = por %p1189_p11, %p1188_p5 }
 0x2d8   : > { %p1186_p0 = pneg %p1185_p1 }
 0x2d9   : > { %p1192_p6 = por %p1191_p4, %p1190_p2 }
 0x2db   : > { %p1193_p8 = pnand %p1192_p6, %p1186_p0 }
 0x2dd   : > { %1196 = shalt.err (!%p1193_p8)
}
 0x2de   : > { %s1246_s17 = smov 256   ;;  %s1247_s18 = smov 16  }
 0x2df   : > { %1032 = dma.vmem_to_hbm [thread:$0]  (%p1375_p12), %s1572_s14, 1024, %s1570_s7, %s772_s15, %s1246_s17, %s1246_s17, %s1247_s18  }
 0x2e0 PF: > { %s800_s4 = sand.u32 1, %s1227_s20   ;;  %p1640_p10 = scmp.ne.s32.totalorder %s1630_s26, 0 }
 0x2e1   : > { %p1641_p13 = scmp.ge.s32.totalorder %s1239_s23, 2  ;;  %s801_s24 = scalar_lea.sflag [#allocation5], %s800_s4 }
 0x2e3   : > { %p1043_p3 = pnand %p1641_p13, %p1640_p10 }
 0x2e5   : > { %1222 = dma.done.wait (!%p1043_p3), %s801_s24, 1024  }
 0x2e6   : > { %1224 = vsyncadd (!%p1043_p3), %s801_s24, 4294966272  ;;  %p20_p7 = scmp.ge.s32.totalorder %s1337_s6, 4   ;;  %s1642_s20 = smov %s1231_s21 }
 0x2e7   : > { %s1643_s21 = smov %s1235_s22  ;;  %s1644_s22 = smov %s1371_s28 }
 0x2e8   : > { %s1645_s23 = smov %s1337_s6  ;;  %22 = sbr.rel (!%p20_p7) target bundleno = 8 (0x8), region = 89 }
 0x2ef   :  { %806 = vsyncpa [#allocation4], 1 }
 0x2f0   :  { %808 = vsyncpa [#allocation4 + $0x1], 1 }
 0x2f1   :  { %809 = vsyncpa [#allocation7], 1 }
 0x2f2   :  { %810 = vsyncpa [#allocation5], 1 }
 0x2f3   :  { %812 = vsyncpa [#allocation5 + $0x1], 1 }

</bundles_post_ra>
